<compile_context>
chip_gen: v7x
topology: tpu7x:2x2x1
jax: 0.10.0
libtpu: 0.0.40
codegen_flags: <defaults>
</compile_context>

<pallas_src>
import functools

import jax
import jax.numpy as jnp
from jax.experimental import pallas as pl
from jax.experimental.pallas import tpu as pltpu


def _box_filter_kernel(x_ref, o_ref, wpad_ref, hpad_ref, *, r):
    """One grid step: box-filter a (Pb, H, W) block of planes.

    wpad_ref: VMEM scratch (Pb, H, W + 2r)  -- W-padded input
    hpad_ref: VMEM scratch (Pb, H + 2r, W)  -- H-padded horizontal result
    """
    k = 2 * r + 1
    inv_k2 = 1.0 / float(k * k)
    pb, h, w = x_ref.shape

    # ---------------- horizontal (W) pass: zero-pad along W, K slice-adds ----
    if r > 0:
        wpad_ref[:, :, 0:r] = jnp.zeros((pb, h, r), jnp.float32)
        wpad_ref[:, :, r + w:r + w + r] = jnp.zeros((pb, h, r), jnp.float32)
    wpad_ref[:, :, r:r + w] = x_ref[...].astype(jnp.float32)

    acc = wpad_ref[:, :, 0:w]                      # d = 0 tap (no zeros init)
    for d in range(1, k):                          # static unroll, small K
        acc = acc + wpad_ref[:, :, d:d + w]

    # ---------------- vertical (H) pass: zero-pad along H, K slice-adds ------
    if r > 0:
        hpad_ref[:, 0:r, :] = jnp.zeros((pb, r, w), jnp.float32)
        hpad_ref[:, r + h:r + h + r, :] = jnp.zeros((pb, r, w), jnp.float32)
    hpad_ref[:, r:r + h, :] = acc

    out = hpad_ref[:, 0:h, :]
    for d in range(1, k):
        out = out + hpad_ref[:, d:d + h, :]

    o_ref[...] = (out * inv_k2).astype(o_ref.dtype)


def _choose_planes_per_block(p, h, w, r, budget_bytes=1 << 20):
    """Largest divisor of p whose padded f32 block fits the byte budget,
    preferring to leave >= 2 grid steps (v7x has 2 TensorCores)."""
    bytes_per_plane = 4 * (h + 2 * r) * (w + 2 * r)   # f32, padded (overestimate)
    divisors = [d for d in range(1, p + 1) if p % d == 0]
    fitting = [d for d in divisors if d * bytes_per_plane <= budget_bytes]
    if not fitting:
        return 1
    multi = [d for d in fitting if p // d >= 2]
    return max(multi) if multi else max(fitting)


def box_filter(x, r):
    """Pallas TPU equivalent of BoxFilter(r)(x) for NCHW input x."""
    n, c, h, w = x.shape
    p = n * c
    xp = x.reshape(p, h, w)                           # fold N, C -> planes

    pb = _choose_planes_per_block(p, h, w, r)
    grid = (p // pb,)

    # TODO(synk): for planes too large for VMEM (e.g. >= 1024x1024 f32 on
    # v7x's 64 MiB), tile H into row blocks with an r-row halo instead of
    # loading whole planes.

    kernel = functools.partial(_box_filter_kernel, r=r)
    out = pl.pallas_call(
        kernel,
        out_shape=jax.ShapeDtypeStruct((p, h, w), x.dtype),
        grid_spec=pltpu.PrefetchScalarGridSpec(
            num_scalar_prefetch=0,
            grid=grid,
            in_specs=[pl.BlockSpec((pb, h, w), lambda i: (i, 0, 0))],
            out_specs=pl.BlockSpec((pb, h, w), lambda i: (i, 0, 0)),
            scratch_shapes=[
                pltpu.VMEM((pb, h, w + 2 * r), jnp.float32),
                pltpu.VMEM((pb, h + 2 * r, w), jnp.float32),
            ],
        ),
        compiler_params=pltpu.CompilerParams(
            dimension_semantics=("parallel",),
            vmem_limit_bytes=32 * 1024 * 1024,
        ),
    )(xp)
    return out.reshape(n, c, h, w)


def _box_filter_ref(x, r):
    """Pure-JAX reference with PyTorch semantics (zero pad, divide by K)."""
    k = 2 * r + 1
    xp = jnp.pad(x, ((0, 0), (0, 0), (0, 0), (r, r)))
    hx = sum(xp[..., :, i:i + x.shape[3]] for i in range(k)) / k
    hp = jnp.pad(hx, ((0, 0), (0, 0), (r, r), (0, 0)))
    vy = sum(hp[..., i:i + x.shape[2], :] for i in range(k)) / k
    return vy


if __name__ == "__main__":
    key = jax.random.PRNGKey(0)
    N, C, H, W = 2, 4, 16, 16
    r = 2  # kernel_size = 5
    x = jax.random.normal(key, (N, C, H, W), dtype=jnp.float32)

    out = jax.block_until_ready(box_filter(x, r))
    ref = _box_filter_ref(x, r)

    assert out.shape == (N, C, H, W)
    assert jnp.allclose(out, ref, atol=1e-5, rtol=1e-5)

    print("KERNEL_OK")
</pallas_src>

<mosaic_0001>
module attributes {stable_mosaic.version = 11 : i64} {
  func.func @_box_filter_kernel(%arg0: i32, %arg1: memref<4x16x16xf32, #tpu.memory_space<vmem>>, %arg2: memref<4x16x16xf32, #tpu.memory_space<vmem>>, %arg3: memref<4x16x20xf32, #tpu.memory_space<vmem>>, %arg4: memref<4x20x16xf32, #tpu.memory_space<vmem>>) attributes {dimension_semantics = [#tpu.dimension_semantics<parallel>], iteration_bounds = array<i64: 2>, scalar_prefetch = 0 : i64, scratch_operands = 2 : i64, tpu.core_type = #tpu.core_type<tc>, window_params = [{transform_indices = @transform_0, window_bounds = array<i64: 4, 16, 16>}, {transform_indices = @transform_1, window_bounds = array<i64: 4, 16, 16>}]} {
    %cst = arith.constant 0.000000e+00 : f32
    %0 = vector.broadcast %cst : f32 to vector<4x16x2xf32>
    %c0 = arith.constant 0 : index
    %c0_0 = arith.constant 0 : index
    %c0_1 = arith.constant 0 : index
    %1 = vector.load %arg3[%c0, %c0_0, %c0_1] : memref<4x16x20xf32, #tpu.memory_space<vmem>>, vector<4x16x2xf32>
    tpu.vector_store %arg3[%c0, %c0_0, %c0_1], %0 {strides = array<i32>} : memref<4x16x20xf32, #tpu.memory_space<vmem>>, vector<4x16x2xf32>,
    %cst_2 = arith.constant 0.000000e+00 : f32
    %2 = vector.broadcast %cst_2 : f32 to vector<4x16x2xf32>
    %c0_3 = arith.constant 0 : index
    %c0_4 = arith.constant 0 : index
    %c18 = arith.constant 18 : index
    %3 = vector.load %arg3[%c0_3, %c0_4, %c18] : memref<4x16x20xf32, #tpu.memory_space<vmem>>, vector<4x16x2xf32>
    tpu.vector_store %arg3[%c0_3, %c0_4, %c18], %2 {strides = array<i32>} : memref<4x16x20xf32, #tpu.memory_space<vmem>>, vector<4x16x2xf32>,
    %c0_5 = arith.constant 0 : index
    %c0_6 = arith.constant 0 : index
    %c0_7 = arith.constant 0 : index
    %4 = vector.load %arg1[%c0_5, %c0_6, %c0_7] : memref<4x16x16xf32, #tpu.memory_space<vmem>>, vector<4x16x16xf32>
    %c0_8 = arith.constant 0 : index
    %c0_9 = arith.constant 0 : index
    %c2 = arith.constant 2 : index
    %5 = vector.load %arg3[%c0_8, %c0_9, %c2] : memref<4x16x20xf32, #tpu.memory_space<vmem>>, vector<4x16x16xf32>
    tpu.vector_store %arg3[%c0_8, %c0_9, %c2], %4 {strides = array<i32>} : memref<4x16x20xf32, #tpu.memory_space<vmem>>, vector<4x16x16xf32>,
    %c0_10 = arith.constant 0 : index
    %c0_11 = arith.constant 0 : index
    %c0_12 = arith.constant 0 : index
    %6 = vector.load %arg3[%c0_10, %c0_11, %c0_12] : memref<4x16x20xf32, #tpu.memory_space<vmem>>, vector<4x16x16xf32>
    %c0_13 = arith.constant 0 : index
    %c0_14 = arith.constant 0 : index
    %c1 = arith.constant 1 : index
    %7 = vector.load %arg3[%c0_13, %c0_14, %c1] : memref<4x16x20xf32, #tpu.memory_space<vmem>>, vector<4x16x16xf32>
    %8 = arith.addf %6, %7 : vector<4x16x16xf32>
    %c0_15 = arith.constant 0 : index
    %c0_16 = arith.constant 0 : index
    %c2_17 = arith.constant 2 : index
    %9 = vector.load %arg3[%c0_15, %c0_16, %c2_17] : memref<4x16x20xf32, #tpu.memory_space<vmem>>, vector<4x16x16xf32>
    %10 = arith.addf %8, %9 : vector<4x16x16xf32>
    %c0_18 = arith.constant 0 : index
    %c0_19 = arith.constant 0 : index
    %c3 = arith.constant 3 : index
    %11 = vector.load %arg3[%c0_18, %c0_19, %c3] : memref<4x16x20xf32, #tpu.memory_space<vmem>>, vector<4x16x16xf32>
    %12 = arith.addf %10, %11 : vector<4x16x16xf32>
    %c0_20 = arith.constant 0 : index
    %c0_21 = arith.constant 0 : index
    %c4 = arith.constant 4 : index
    %13 = vector.load %arg3[%c0_20, %c0_21, %c4] : memref<4x16x20xf32, #tpu.memory_space<vmem>>, vector<4x16x16xf32>
    %14 = arith.addf %12, %13 : vector<4x16x16xf32>
    %cst_22 = arith.constant 0.000000e+00 : f32
    %15 = vector.broadcast %cst_22 : f32 to vector<4x2x16xf32>
    %c0_23 = arith.constant 0 : index
    %c0_24 = arith.constant 0 : index
    %c0_25 = arith.constant 0 : index
    %16 = vector.load %arg4[%c0_23, %c0_24, %c0_25] : memref<4x20x16xf32, #tpu.memory_space<vmem>>, vector<4x2x16xf32>
    tpu.vector_store %arg4[%c0_23, %c0_24, %c0_25], %15 {strides = array<i32>} : memref<4x20x16xf32, #tpu.memory_space<vmem>>, vector<4x2x16xf32>,
    %cst_26 = arith.constant 0.000000e+00 : f32
    %17 = vector.broadcast %cst_26 : f32 to vector<4x2x16xf32>
    %c0_27 = arith.constant 0 : index
    %c18_28 = arith.constant 18 : index
    %c0_29 = arith.constant 0 : index
    %18 = vector.load %arg4[%c0_27, %c18_28, %c0_29] : memref<4x20x16xf32, #tpu.memory_space<vmem>>, vector<4x2x16xf32>
    tpu.vector_store %arg4[%c0_27, %c18_28, %c0_29], %17 {strides = array<i32>} : memref<4x20x16xf32, #tpu.memory_space<vmem>>, vector<4x2x16xf32>,
    %c0_30 = arith.constant 0 : index
    %c2_31 = arith.constant 2 : index
    %c0_32 = arith.constant 0 : index
    %19 = vector.load %arg4[%c0_30, %c2_31, %c0_32] : memref<4x20x16xf32, #tpu.memory_space<vmem>>, vector<4x16x16xf32>
    tpu.vector_store %arg4[%c0_30, %c2_31, %c0_32], %14 {strides = array<i32>} : memref<4x20x16xf32, #tpu.memory_space<vmem>>, vector<4x16x16xf32>,
    %c0_33 = arith.constant 0 : index
    %c0_34 = arith.constant 0 : index
    %c0_35 = arith.constant 0 : index
    %20 = vector.load %arg4[%c0_33, %c0_34, %c0_35] : memref<4x20x16xf32, #tpu.memory_space<vmem>>, vector<4x16x16xf32>
    %c0_36 = arith.constant 0 : index
    %c1_37 = arith.constant 1 : index
    %c0_38 = arith.constant 0 : index
    %21 = vector.load %arg4[%c0_36, %c1_37, %c0_38] : memref<4x20x16xf32, #tpu.memory_space<vmem>>, vector<4x16x16xf32>
    %22 = arith.addf %20, %21 : vector<4x16x16xf32>
    %c0_39 = arith.constant 0 : index
    %c2_40 = arith.constant 2 : index
    %c0_41 = arith.constant 0 : index
    %23 = vector.load %arg4[%c0_39, %c2_40, %c0_41] : memref<4x20x16xf32, #tpu.memory_space<vmem>>, vector<4x16x16xf32>
    %24 = arith.addf %22, %23 : vector<4x16x16xf32>
    %c0_42 = arith.constant 0 : index
    %c3_43 = arith.constant 3 : index
    %c0_44 = arith.constant 0 : index
    %25 = vector.load %arg4[%c0_42, %c3_43, %c0_44] : memref<4x20x16xf32, #tpu.memory_space<vmem>>, vector<4x16x16xf32>
    %26 = arith.addf %24, %25 : vector<4x16x16xf32>
    %c0_45 = arith.constant 0 : index
    %c4_46 = arith.constant 4 : index
    %c0_47 = arith.constant 0 : index
    %27 = vector.load %arg4[%c0_45, %c4_46, %c0_47] : memref<4x20x16xf32, #tpu.memory_space<vmem>>, vector<4x16x16xf32>
    %28 = arith.addf %26, %27 : vector<4x16x16xf32>
    %cst_48 = arith.constant 4.000000e-02 : f32
    %29 = vector.broadcast %cst_48 : f32 to vector<4x16x16xf32>
    %30 = arith.mulf %28, %29 : vector<4x16x16xf32>
    %c0_49 = arith.constant 0 : index
    %c0_50 = arith.constant 0 : index
    %c0_51 = arith.constant 0 : index
    %31 = vector.load %arg2[%c0_49, %c0_50, %c0_51] : memref<4x16x16xf32, #tpu.memory_space<vmem>>, vector<4x16x16xf32>
    tpu.vector_store %arg2[%c0_49, %c0_50, %c0_51], %30 {strides = array<i32>} : memref<4x16x16xf32, #tpu.memory_space<vmem>>, vector<4x16x16xf32>,
    return
  }
  func.func @transform_0(%arg0: i32) -> (i32, i32, i32) {
    %c0_i32 = arith.constant 0 : i32
    %c0_i32_0 = arith.constant 0 : i32
    %c0_i32_1 = arith.constant 0 : i32
    return %arg0, %c0_i32, %c0_i32_0 : i32, i32, i32
  }
  func.func @transform_1(%arg0: i32) -> (i32, i32, i32) {
    %c0_i32 = arith.constant 0 : i32
    %c0_i32_0 = arith.constant 0 : i32
    %c0_i32_1 = arith.constant 0 : i32
    return %arg0, %c0_i32, %c0_i32_0 : i32, i32, i32
  }
}

</mosaic_0001>

<bundles_post_ra>
// kernel: tpu_custom_call.1
= control target key start
LH: loop header
LB: loop body
LE: loop exit
PB: predicated region body
PF: predicated region fallthrough
CT: control target
= control target key end

     0   :  { %6 = vsyncpa [#allocation5], 0  ;;  %s1038_s0 = inlined_call_operand.hbm [shape: f32[8,16,16], index: 0, kind: input, shape index: {}]   ;;  %s1039_s1 = inlined_call_operand.hbm [shape: f32[8,16,16], index: 1, kind: output, shape index: {}]  }
   0x1   :  { %8 = vsyncpa [#allocation5 + $0x1], 0 }
   0x2   :  { %9 = vsyncpa [#allocation6], 0 }
   0x3   :  { %11 = vsyncpa [#allocation6 + $0x1], 0  ;;  %s739_s6 = smov 0   ;;  %s741_s7 = smov 0  }
   0x4   :  { %s743_s8 = smov 0   ;;  %s745_s9 = smov 0  }
   0x5 LB: > { %s760_s10 = sadd.s32 4294967295, %s715_s9   ;;  %s543_s11 = sadd.s32 4294967294, %s715_s9   ;;  %s715_s9 = sphi %s745_s9, %s1052_s9   ;;  %s711_s8 = sphi %s743_s8, %s1051_s8   ;;  %s707_s7 = sphi %s741_s7, %s1050_s7   ;;  %s703_s6 = sphi %s739_s6, %s1049_s6  }
   0x6   : > { %s764_s12 = sadd.s32 1, %s715_s9   ;;  %s24_s13 = sadd.s32 1, %s711_s8 }
   0x7   : > { %s21_s14 = ssub.s32 %s715_s9, %s764_s12  ;;  %p31_p0 = scmp.ne.s32.totalorder %s711_s8, %s707_s7 }
   0x8   : > { %p22_p1 = scmp.eq.s32.totalorder %s21_s14, 0  ;;  %p32_p2 = scmp.eq.s32.totalorder %s715_s9, 0 }
   0x9   : > { %p37_p3 = scmp.ne.s32.totalorder %s707_s7, %s703_s6  ;;  %p38_p4 = scmp.eq.s32.totalorder %s760_s10, 0 }
   0xa   : > { %s776_s15 = scalar_select %p22_p1, %s711_s8, %s24_s13  }
   0xb   : > { %p778_p5 = por %p32_p2, %p31_p0  ;;  %p782_p6 = por %p38_p4, %p37_p3 }
   0xc   : > { %p61_p7 = scmp.eq.s32.totalorder %s760_s10, 1  ;;  %p67_p8 = scmp.eq.s32.totalorder %s543_s11, 1 }
   0xd   : > { %p575_p10 = scmp.lt.s32.totalorder %s715_s9, 2  ;;  %s87_s20 = sand.u32 1, %s711_s8  }
   0xe   : > { %p789_p11 = por %p61_p7, %p31_p0  ;;  %p793_p12 = por %p67_p8, %p37_p3 }
   0xf   : > { %s560_s21 = sshll.u32 %s715_s9, 10  ;;  %s546_s22 = sshll.u32 %s87_s20, 6 }
  0x10   : > { %s1043_s18 = scalar_select %p789_p11, 1, 0 }
  0x11   : > { %s1044_s19 = scalar_select %p793_p12, 1, 0 }
  0x12   : > { %s802_s25 = scalar_lea.hbm %s1038_s0, %s560_s21  ;;  %s91_s26 = scalar_lea.vmem [#allocation4], %s546_s22 }
  0x13   : > { %s99_s27 = sshll.u32 %s91_s26, 4  ;;  %p806_p13 = pnand %p575_p10, %p778_p5  ;;  %s810_s27 = int_to_ptr.vmem [resolvable:$true] %s99_s27 }
  0x14   : > { %s812_s29 = scalar_lea.sflag [#allocation5], %s87_s20  ;;  %s619_s30 = scalar_lea.hbm %s802_s25, 1024 }
  0x15   : > { %p620_p0 = scmp.ne.s32.totalorder %s802_s25, %s619_s30  ;;  %p621_p1 = pneg %p806_p13 }
  0x16   : > { %s624_s4 = scalar_lea.hbm %s1038_s0, 2048  ;;  %p625_p4 = scmp.lt.u32.totalorder %s802_s25, %s1038_s0 }
  0x17   : > { %p622_p2 = pnand %p621_p1, %p620_p0  ;;  %p626_p5 = scmp.lt.u32.totalorder %s624_s4, %s619_s30 }
  0x18   : > { %p628_p8 = scmp.lt.u32.totalorder %s619_s30, %s802_s25 }
  0x19   : > { %p623_p3 = pneg %p622_p2  ;;  %p627_p7 = por %p626_p5, %p625_p4 }
  0x1b   : > { %p629_p10 = por %p628_p8, %p627_p7 }
  0x1d   : > { %p630_p9 = pnand %p629_p10, %p623_p3 }
  0x1f   : > { %633 = shalt.err (!%p630_p9)
}
  0x20   : > { %s634_s13 = scalar_lea.vmem %s810_s27, 1024  ;;  %s717_s14 = smov [#allocation4]  }
  0x21   : > { %p635_p0 = scmp.ne.s32.totalorder %s810_s27, %s634_s13  ;;  %s639_s16 = sshll.u32 %s717_s14, 4  ;;  %s640_s16 = int_to_ptr.vmem [resolvable:$false] %s639_s16 }
  0x22   : > { %s641_s20 = scalar_lea.vmem %s640_s16, 2048  ;;  %p642_p11 = scmp.lt.s32.totalorder %s810_s27, %s640_s16 }
  0x23   : > { %p637_p2 = pnand %p635_p0, %p621_p1  ;;  %p643_p4 = scmp.lt.s32.totalorder %s641_s20, %s634_s13 }
  0x25   : > { %p638_p12 = pneg %p637_p2  ;;  %p644_p5 = por %p643_p4, %p642_p11 }
  0x27   : > { %p645_p7 = pnand %p644_p5, %p638_p12 }
  0x29   : > { %648 = shalt.err (!%p645_p7)
}
  0x2a   : > { %s718_s21 = smov 128   ;;  %s719_s22 = smov 8  }
  0x2b   : > { %570 = dma.hbm_to_vmem [thread:$0]  (!%p806_p13), %s802_s25, 1024, %s810_s27, %s812_s29, %s718_s21, %s718_s21, %s719_s22  }
  0x2c   : > { %p550_p9 = scmp.ge.s32.totalorder %s715_s9, 1  ;;  %p107_p1 = scmp.lt.s32.totalorder %s715_s9, 3 }
  0x2e   : > { %p108_p3 = pnand %p550_p9, %p107_p1 }
  0x2f   : > { %s843_s23 = sand.u32 (!%p108_p3), 1, %s707_s7  }
  0x30   : > { %111 = sbr.rel (%p108_p3) target bundleno = 397 (0x18d), region = 24  ;;  %s551_s24 = sshll.u32 (!%p108_p3), %s843_s23, 6 }
  0x31   : > { %s114_s26 = scalar_lea.sflag (!%p108_p3), [#allocation5], %s843_s23  ;;  %s849_s30 = scalar_lea.vmem (!%p108_p3), [#allocation4], %s551_s24 }
  0x37   : > { %694 = dma.done.wait (%p782_p6), %s114_s26, 1024  }
  0x38   : > { %696 = vsyncadd (%p782_p6), %s114_s26, 4294966272  ;;  %vm138_vm0 = vcmask 15360   ;;  %vm147_vm1 = vcmask 162960   ;;  %v720_v0 = vmov 0.0   ;;  %v156_v1 = vld [vmem:[%s849_s30] sm:$0xff]  ;;  %v158_v2 = vld [vmem:[%s849_s30 + $0x10] sm:$0xff] }
  0x39   : > { %139 = vst.msk [vmem:[#allocation2] sm:$0xff] %vm138_vm0, %v720_v0  ;;  %140 = vst.msk [vmem:[#allocation2 + $0x8] sm:$0xff] %vm138_vm0, %v720_v0  ;;  %s721_s17 = smov 2   ;;  %v157_v3 = vld [vmem:[%s849_s30 + $0x8] sm:$0xff]  ;;  %v159_v4 = vld [vmem:[%s849_s30 + $0x18] sm:$0xff]  ;;  %vm196_vm2 = vcmask 146448  }
  0x3a   : > { %141 = vst.msk [vmem:[#allocation2 + $0x10] sm:$0xff] %vm138_vm0, %v720_v0  ;;  %142 = vst.msk [vmem:[#allocation2 + $0x18] sm:$0xff] %vm138_vm0, %v720_v0  ;;  %172 = vrot.lane.b32.xlu0 %v156_v1, %s721_s17  ;;  %176 = vrot.lane.b32.xlu1 %v158_v2, %s721_s17  ;;  %v160_v5 = vld [vmem:[%s849_s30 + $0x20] sm:$0xff]  ;;  %v161_v6 = vld [vmem:[%s849_s30 + $0x28] sm:$0xff]  ;;  %s722_s25 = smov 127   ;;  %s723_s27 = smov 126  }
  0x3b   : > { %143 = vst.msk [vmem:[#allocation2 + $0x20] sm:$0xff] %vm138_vm0, %v720_v0  ;;  %144 = vst.msk [vmem:[#allocation2 + $0x28] sm:$0xff] %vm138_vm0, %v720_v0  ;;  %v162_v7 = vld [vmem:[%s849_s30 + $0x30] sm:$0xff]  ;;  %v163_v8 = vld [vmem:[%s849_s30 + $0x38] sm:$0xff]  ;;  %s724_s28 = smov 125   ;;  %vm349_vm3 = vcmask 123904  }
  0x3c   : > { %145 = vst.msk [vmem:[#allocation2 + $0x30] sm:$0xff] %vm138_vm0, %v720_v0  ;;  %146 = vst.msk [vmem:[#allocation2 + $0x38] sm:$0xff] %vm138_vm0, %v720_v0  ;;  %s725_s29 = smov 124   ;;  %vm358_vm4 = vcmask 130048   ;;  %s969_s2 = scalar_lea.vmem [#allocation7], %s551_s24 }
  0x3d   : > { %148 = vst.msk [vmem:[#allocation2] sm:$0xff] %vm147_vm1, %v720_v0  ;;  %150 = vst.msk [vmem:[#allocation2 + $0x10] sm:$0xff] %vm147_vm1, %v720_v0  ;;  %s562_s3 = sshll.u32 %s760_s10, 10  ;;  %s470_s4 = sshll.u32 %s969_s2, 4  ;;  %s990_s4 = int_to_ptr.vmem [resolvable:$true] %s470_s4 }
  0x3e   : > { %149 = vst.msk [vmem:[#allocation2 + $0x8] sm:$0xff] %vm147_vm1, %v720_v0  ;;  %151 = vst.msk [vmem:[#allocation2 + $0x18] sm:$0xff] %vm147_vm1, %v720_v0  ;;  %174 = vrot.lane.b32.xlu0 %v157_v3, %s721_s17  ;;  %178 = vrot.lane.b32.xlu1 %v159_v4, %s721_s17  ;;  %s988_s13 = scalar_lea.hbm %s1039_s1, %s562_s3  ;;  %s456_s10 = scalar_lea.sflag [#allocation6], %s843_s23 }
  0x3f   : > { %152 = vst.msk [vmem:[#allocation2 + $0x20] sm:$0xff] %vm147_vm1, %v720_v0  ;;  %153 = vst.msk [vmem:[#allocation2 + $0x28] sm:$0xff] %vm147_vm1, %v720_v0  ;;  %s649_s14 = scalar_lea.vmem %s990_s4, 1024  ;;  %p1046_p11 = scmp.ne.s32.totalorder %s1043_s18, 0 }
  0x40   : > { %154 = vst.msk [vmem:[#allocation2 + $0x30] sm:$0xff] %vm147_vm1, %v720_v0  ;;  %155 = vst.msk [vmem:[#allocation2 + $0x38] sm:$0xff] %vm147_vm1, %v720_v0  ;;  %p650_p6 = scmp.ne.s32.totalorder %s990_s4, %s649_s14  ;;  %s726_s16 = smov [#allocation7]  }
  0x41   : > { %350 = vst.msk [vmem:[#allocation3] sm:$0x3] %vm349_vm3, %v720_v0  ;;  %351 = vst.msk [vmem:[#allocation3 + $0x18] sm:$0x3] %vm349_vm3, %v720_v0  ;;  %s653_s20 = sshll.u32 %s726_s16, 4  ;;  %s654_s20 = int_to_ptr.vmem [resolvable:$false] %s653_s20 }
  0x42   : > { %180 = vrot.lane.b32.xlu0 %v160_v5, %s721_s17  ;;  %182 = vrot.lane.b32.xlu1 %v161_v6, %s721_s17  ;;  %352 = vst.msk [vmem:[#allocation3 + $0x30] sm:$0x3] %vm349_vm3, %v720_v0  ;;  %353 = vst.msk [vmem:[#allocation3 + $0x48] sm:$0x3] %vm349_vm3, %v720_v0  ;;  %p651_p12 = pnand %p650_p6, %p1046_p11  ;;  %s655_s21 = scalar_lea.vmem %s654_s20, 2048 }
  0x43   : > { %354 = vst.msk [vmem:[#allocation3 + $0x12] sm:$0x3] %vm349_vm3, %v720_v0  ;;  %355 = vst.msk [vmem:[#allocation3 + $0x2a] sm:$0x3] %vm349_vm3, %v720_v0  ;;  %p656_p8 = scmp.lt.s32.totalorder %s990_s4, %s654_s20  ;;  %p657_p10 = scmp.lt.s32.totalorder %s655_s21, %s649_s14 }
  0x44   : > { %356 = vst.msk [vmem:[#allocation3 + $0x42] sm:$0x3] %vm349_vm3, %v720_v0  ;;  %357 = vst.msk [vmem:[#allocation3 + $0x5a] sm:$0x3] %vm349_vm3, %v720_v0  ;;  %p652_p13 = pneg %p651_p12 }
  0x45   : > { %p658_p0 = por %p657_p10, %p656_p8 }
  0x46   : > { %184 = vrot.lane.b32.xlu0 %v162_v7, %s721_s17  ;;  %186 = vrot.lane.b32.xlu1 %v163_v8, %s721_s17 }
  0x47   : > { %p659_p2 = pnand %p658_p0, %p652_p13 }
  0xac   : > { %v173_v9 = vpop.permute.xlu0 %172  ;;  %v177_v10 = vpop.permute.xlu1 %176 }
  0xad   : > { %197 = vst.msk [vmem:[#allocation2] sm:$0xff] %vm196_vm2, %v173_v9  ;;  %199 = vst.msk [vmem:[#allocation2 + $0x10] sm:$0xff] %vm196_vm2, %v177_v10 }
  0xb0   : > { %v175_v11 = vpop.permute.xlu0 %174  ;;  %v179_v12 = vpop.permute.xlu1 %178 }
  0xb1   : > { %198 = vst.msk [vmem:[#allocation2 + $0x8] sm:$0xff] %vm196_vm2, %v175_v11  ;;  %200 = vst.msk [vmem:[#allocation2 + $0x18] sm:$0xff] %vm196_vm2, %v179_v12 }
  0xb4   : > { %v181_v13 = vpop.permute.xlu0 %180  ;;  %v891_v14 = vld [vmem:[#allocation2] sm:$0xff]  ;;  %v183_v15 = vpop.permute.xlu1 %182  ;;  %v896_v16 = vld [vmem:[#allocation2 + $0x10] sm:$0xff] }
  0xb5   : > { %201 = vst.msk [vmem:[#allocation2 + $0x20] sm:$0xff] %vm196_vm2, %v181_v13  ;;  %221 = vrot.lane.b32.xlu0 %v891_v14, %s722_s25  ;;  %202 = vst.msk [vmem:[#allocation2 + $0x28] sm:$0xff] %vm196_vm2, %v183_v15 }
  0xb8   : > { %v185_v17 = vpop.permute.xlu0 %184  ;;  %v898_v18 = vld [vmem:[#allocation2 + $0x8] sm:$0xff]  ;;  %v187_v19 = vpop.permute.xlu1 %186  ;;  %v904_v20 = vld [vmem:[#allocation2 + $0x18] sm:$0xff] }
  0xb9   : > { %203 = vst.msk [vmem:[#allocation2 + $0x30] sm:$0xff] %vm196_vm2, %v185_v17  ;;  %223 = vrot.lane.b32.xlu1 %v898_v18, %s722_s25  ;;  %225 = vrot.lane.b32.xlu0 %v896_v16, %s722_s25  ;;  %204 = vst.msk [vmem:[#allocation2 + $0x38] sm:$0xff] %vm196_vm2, %v187_v19 }
  0xbc   : > { %v906_v21 = vld [vmem:[#allocation2 + $0x20] sm:$0xff]  ;;  %v910_v22 = vld [vmem:[#allocation2 + $0x28] sm:$0xff] }
  0xbd   : > { %227 = vrot.lane.b32.xlu1 %v904_v20, %s722_s25  ;;  %229 = vrot.lane.b32.xlu0 %v906_v21, %s722_s25 }
  0xc0   : > { %v912_v23 = vld [vmem:[#allocation2 + $0x30] sm:$0xff]  ;;  %v916_v24 = vld [vmem:[#allocation2 + $0x38] sm:$0xff] }
  0xc1   : > { %231 = vrot.lane.b32.xlu1 %v910_v22, %s722_s25  ;;  %233 = vrot.lane.b32.xlu0 %v912_v23, %s722_s25 }
  0xc5   : > { %235 = vrot.lane.b32.xlu1 %v916_v24, %s722_s25  ;;  %253 = vrot.lane.b32.xlu0 %v891_v14, %s723_s27 }
  0xc9   : > { %255 = vrot.lane.b32.xlu1 %v898_v18, %s723_s27  ;;  %257 = vrot.lane.b32.xlu0 %v896_v16, %s723_s27 }
  0xcd   : > { %259 = vrot.lane.b32.xlu1 %v904_v20, %s723_s27  ;;  %261 = vrot.lane.b32.xlu0 %v906_v21, %s723_s27 }
  0xd1   : > { %263 = vrot.lane.b32.xlu1 %v910_v22, %s723_s27  ;;  %265 = vrot.lane.b32.xlu0 %v912_v23, %s723_s27 }
  0xd5   : > { %267 = vrot.lane.b32.xlu1 %v916_v24, %s723_s27  ;;  %285 = vrot.lane.b32.xlu0 %v891_v14, %s724_s28 }
  0xd9   : > { %287 = vrot.lane.b32.xlu1 %v898_v18, %s724_s28  ;;  %289 = vrot.lane.b32.xlu0 %v896_v16, %s724_s28 }
  0xdd   : > { %291 = vrot.lane.b32.xlu1 %v904_v20, %s724_s28  ;;  %293 = vrot.lane.b32.xlu0 %v906_v21, %s724_s28 }
  0xe1   : > { %295 = vrot.lane.b32.xlu1 %v910_v22, %s724_s28  ;;  %297 = vrot.lane.b32.xlu0 %v912_v23, %s724_s28 }
  0xe5   : > { %299 = vrot.lane.b32.xlu1 %v916_v24, %s724_s28  ;;  %317 = vrot.lane.b32.xlu0 %v891_v14, %s725_s29 }
  0xe9   : > { %319 = vrot.lane.b32.xlu1 %v898_v18, %s725_s29  ;;  %321 = vrot.lane.b32.xlu0 %v896_v16, %s725_s29 }
  0xed   : > { %323 = vrot.lane.b32.xlu1 %v904_v20, %s725_s29  ;;  %325 = vrot.lane.b32.xlu0 %v906_v21, %s725_s29 }
  0xf1   : > { %327 = vrot.lane.b32.xlu1 %v910_v22, %s725_s29  ;;  %329 = vrot.lane.b32.xlu0 %v912_v23, %s725_s29 }
  0xf5   : > { %331 = vrot.lane.b32.xlu1 %v916_v24, %s725_s29 }
 0x127   : > { %v222_v25 = vpop.permute.xlu0 %221 }
 0x128   : > { %v245_v46 = vadd.f32 %v222_v25, %v891_v14 }
 0x12b   : > { %v224_v26 = vpop.permute.xlu1 %223  ;;  %v226_v27 = vpop.permute.xlu0 %225 }
 0x12c   : > { %v246_v50 = vadd.f32 %v224_v26, %v898_v18  ;;  %v247_v51 = vadd.f32 %v226_v27, %v896_v16 }
 0x12f   : > { %v228_v28 = vpop.permute.xlu1 %227  ;;  %v230_v29 = vpop.permute.xlu0 %229 }
 0x130   : > { %v248_v58 = vadd.f32 %v228_v28, %v904_v20  ;;  %v249_v59 = vadd.f32 %v230_v29, %v906_v21 }
 0x133   : > { %v232_v30 = vpop.permute.xlu1 %231  ;;  %v234_v31 = vpop.permute.xlu0 %233 }
 0x134   : > { %v250_v4 = vadd.f32 %v232_v30, %v910_v22  ;;  %v251_v5 = vadd.f32 %v234_v31, %v912_v23 }
 0x137   : > { %v236_v32 = vpop.permute.xlu1 %235  ;;  %v254_v33 = vpop.permute.xlu0 %253 }
 0x138   : > { %v277_v49 = vadd.f32 %v254_v33, %v245_v46  ;;  %v252_v16 = vadd.f32 %v236_v32, %v916_v24 }
 0x13b   : > { %v256_v34 = vpop.permute.xlu1 %255  ;;  %v258_v35 = vpop.permute.xlu0 %257 }
 0x13c   : > { %v278_v55 = vadd.f32 %v256_v34, %v246_v50  ;;  %v279_v56 = vadd.f32 %v258_v35, %v247_v51 }
 0x13f   : > { %v260_v36 = vpop.permute.xlu1 %259  ;;  %v262_v37 = vpop.permute.xlu0 %261 }
 0x140   : > { %v280_v0 = vadd.f32 %v260_v36, %v248_v58  ;;  %v281_v1 = vadd.f32 %v262_v37, %v249_v59 }
 0x143   : > { %v264_v38 = vpop.permute.xlu1 %263  ;;  %v266_v39 = vpop.permute.xlu0 %265 }
 0x144   : > { %v282_v10 = vadd.f32 %v264_v38, %v250_v4  ;;  %v283_v11 = vadd.f32 %v266_v39, %v251_v5 }
 0x147   : > { %v268_v40 = vpop.permute.xlu1 %267  ;;  %v286_v41 = vpop.permute.xlu0 %285 }
 0x148   : > { %v309_v52 = vadd.f32 %v286_v41, %v277_v49  ;;  %v284_v23 = vadd.f32 %v268_v40, %v252_v16 }
 0x14b   : > { %v288_v42 = vpop.permute.xlu1 %287  ;;  %v290_v43 = vpop.permute.xlu0 %289 }
 0x14c   : > { %v310_v60 = vadd.f32 %v288_v42, %v278_v55  ;;  %v311_v61 = vadd.f32 %v290_v43, %v279_v56 }
 0x14f   : > { %v292_v44 = vpop.permute.xlu1 %291  ;;  %v294_v45 = vpop.permute.xlu0 %293 }
 0x150   : > { %v312_v6 = vadd.f32 %v292_v44, %v280_v0  ;;  %v313_v7 = vadd.f32 %v294_v45, %v281_v1 }
 0x153   : > { %v296_v47 = vpop.permute.xlu1 %295  ;;  %v298_v48 = vpop.permute.xlu0 %297 }
 0x154   : > { %v314_v17 = vadd.f32 %v296_v47, %v282_v10  ;;  %v315_v18 = vadd.f32 %v298_v48, %v283_v11 }
 0x157   : > { %v300_v53 = vpop.permute.xlu1 %299  ;;  %v318_v54 = vpop.permute.xlu0 %317 }
 0x158   : > { %v341_v57 = vadd.f32 %v318_v54, %v309_v52  ;;  %v316_v30 = vadd.f32 %v300_v53, %v284_v23 }
 0x15a   : > { %359 = vst.msk [vmem:[#allocation3 + $0x2] sm:$0xff] %vm358_vm4, %v341_v57 }
 0x15b   : > { %v320_v62 = vpop.permute.xlu1 %319  ;;  %v322_v63 = vpop.permute.xlu0 %321 }
 0x15c   : > { %v342_v2 = vadd.f32 %v320_v62, %v310_v60  ;;  %v343_v3 = vadd.f32 %v322_v63, %v311_v61 }
 0x15e   : > { %360 = vst.msk [vmem:[#allocation3 + $0xa] sm:$0xff] %vm358_vm4, %v342_v2  ;;  %361 = vst.msk [vmem:[#allocation3 + $0x1a] sm:$0xff] %vm358_vm4, %v343_v3 }
 0x15f   : > { %v324_v8 = vpop.permute.xlu1 %323  ;;  %v326_v9 = vpop.permute.xlu0 %325 }
 0x160   : > { %v344_v12 = vadd.f32 %v324_v8, %v312_v6  ;;  %v345_v13 = vadd.f32 %v326_v9, %v313_v7 }
 0x161   : > { %v367_v14 = vld [vmem:[#allocation3] sm:$0xff] }
 0x162   : > { %v375_v15 = vld [vmem:[#allocation3 + $0x1] sm:$0xff]  ;;  %362 = vst.msk [vmem:[#allocation3 + $0x22] sm:$0xff] %vm358_vm4, %v344_v12  ;;  %363 = vst.msk [vmem:[#allocation3 + $0x32] sm:$0xff] %vm358_vm4, %v345_v13 }
 0x163   : > { %v383_v19 = vadd.f32 %v375_v15, %v367_v14  ;;  %v391_v20 = vld [vmem:[#allocation3 + $0x2] sm:$0xff]  ;;  %v328_v21 = vpop.permute.xlu1 %327  ;;  %v330_v22 = vpop.permute.xlu0 %329 }
 0x164   : > { %v346_v26 = vadd.f32 %v328_v21, %v314_v17  ;;  %v347_v27 = vadd.f32 %v330_v22, %v315_v18 }
 0x165   : > { %v399_v25 = vadd.f32 %v391_v20, %v383_v19  ;;  %v368_v28 = vld [vmem:[#allocation3 + $0x8] sm:$0xff]  ;;  %v369_v34 = vld [vmem:[#allocation3 + $0x18] sm:$0xff] }
 0x166   : > { %v376_v29 = vld [vmem:[#allocation3 + $0x9] sm:$0xff]  ;;  %364 = vst.msk [vmem:[#allocation3 + $0x3a] sm:$0xff] %vm358_vm4, %v346_v26  ;;  %365 = vst.msk [vmem:[#allocation3 + $0x4a] sm:$0xff] %vm358_vm4, %v347_v27  ;;  %v377_v35 = vld [vmem:[#allocation3 + $0x19] sm:$0xff] }
 0x167   : > { %v384_v31 = vadd.f32 %v376_v29, %v368_v28  ;;  %v407_v33 = vld [vmem:[#allocation3 + $0x3] sm:$0xff]  ;;  %v332_v36 = vpop.permute.xlu1 %331  ;;  %v408_v38 = vld [vmem:[#allocation3 + $0xb] sm:$0xff]  ;;  %v385_v40 = vadd.f32 %v377_v35, %v369_v34  ;;  %v393_v43 = vld [vmem:[#allocation3 + $0x1a] sm:$0xff] }
 0x168   : > { %v392_v24 = vld [vmem:[#allocation3 + $0xa] sm:$0xff]  ;;  %v415_v32 = vadd.f32 %v407_v33, %v399_v25  ;;  %v348_v41 = vadd.f32 %v332_v36, %v316_v30 }
 0x169   : > { %v400_v37 = vadd.f32 %v392_v24, %v384_v31  ;;  %v423_v39 = vld [vmem:[#allocation3 + $0x4] sm:$0xff]  ;;  %v424_v47 = vld [vmem:[#allocation3 + $0xc] sm:$0xff]  ;;  %v401_v48 = vadd.f32 %v393_v43, %v385_v40  ;;  %v409_v50 = vld [vmem:[#allocation3 + $0x1b] sm:$0xff] }
 0x16a   : > { %v431_v42 = vadd.f32 %v423_v39, %v415_v32  ;;  %v370_v44 = vld [vmem:[#allocation3 + $0x20] sm:$0xff]  ;;  %366 = vst.msk [vmem:[#allocation3 + $0x52] sm:$0xff] %vm358_vm4, %v348_v41  ;;  %v371_v53 = vld [vmem:[#allocation3 + $0x30] sm:$0xff] }
 0x16b   : > { %v378_v45 = vld [vmem:[#allocation3 + $0x21] sm:$0xff]  ;;  %v416_v46 = vadd.f32 %v408_v38, %v400_v37  ;;  %v379_v54 = vld [vmem:[#allocation3 + $0x31] sm:$0xff]  ;;  %v417_v58 = vadd.f32 %v409_v50, %v401_v48 }
 0x16c   : > { %v386_v49 = vadd.f32 %v378_v45, %v370_v44  ;;  %v439_v51 = vmul.f32 0.04, %v431_v42  ;;  %v394_v52 = vld [vmem:[#allocation3 + $0x22] sm:$0xff]  ;;  %v387_v60 = vadd.f32 %v379_v54, %v371_v53  ;;  %v395_v61 = vld [vmem:[#allocation3 + $0x32] sm:$0xff] }
 0x16d   : > { %v432_v55 = vadd.f32 %v424_v47, %v416_v46  ;;  %v410_v57 = vld [vmem:[#allocation3 + $0x23] sm:$0xff]  ;;  %v372_v62 = vld [vmem:[#allocation3 + $0x38] sm:$0xff] }
 0x16e   : > { %v402_v56 = vadd.f32 %v394_v52, %v386_v49  ;;  %v425_v59 = vld [vmem:[#allocation3 + $0x1c] sm:$0xff]  ;;  %447 = vst.msk [vmem:[%s969_s2] sm:$0xff] %vm358_vm4, %v439_v51  ;;  %v403_v3 = vadd.f32 %v395_v61, %v387_v60  ;;  %v411_v4 = vld [vmem:[#allocation3 + $0x33] sm:$0xff]  ;;  %v426_v5 = vld [vmem:[#allocation3 + $0x24] sm:$0xff] }
 0x16f   : > { %v380_v63 = vld [vmem:[#allocation3 + $0x39] sm:$0xff]  ;;  %v440_v0 = vmul.f32 0.04, %v432_v55  ;;  %v433_v2 = vadd.f32 %v425_v59, %v417_v58  ;;  %v373_v7 = vld [vmem:[#allocation3 + $0x48] sm:$0xff] }
 0x170   : > { %v418_v1 = vadd.f32 %v410_v57, %v402_v56  ;;  %v388_v6 = vadd.f32 %v380_v63, %v372_v62  ;;  %v381_v8 = vld [vmem:[#allocation3 + $0x49] sm:$0xff]  ;;  %v396_v11 = vld [vmem:[#allocation3 + $0x3a] sm:$0xff]  ;;  %v419_v12 = vadd.f32 %v411_v4, %v403_v3 }
 0x171   : > { %448 = vst.msk [vmem:[%s969_s2 + $0x8] sm:$0xff] %vm358_vm4, %v440_v0  ;;  %v441_v10 = vmul.f32 0.04, %v433_v2  ;;  %v427_v13 = vld [vmem:[#allocation3 + $0x34] sm:$0xff]  ;;  %v389_v14 = vadd.f32 %v381_v8, %v373_v7  ;;  %v397_v16 = vld [vmem:[#allocation3 + $0x4a] sm:$0xff]  ;;  %v428_v28 = vld [vmem:[#allocation3 + $0x3c] sm:$0xff] }
 0x172   : > { %v434_v9 = vadd.f32 %v426_v5, %v418_v1  ;;  %v404_v15 = vadd.f32 %v396_v11, %v388_v6  ;;  %v374_v17 = vld [vmem:[#allocation3 + $0x50] sm:$0xff]  ;;  %v412_v20 = vld [vmem:[#allocation3 + $0x3b] sm:$0xff]  ;;  %v435_v21 = vadd.f32 %v427_v13, %v419_v12 }
 0x173   : > { %v382_v18 = vld [vmem:[#allocation3 + $0x51] sm:$0xff]  ;;  %449 = vst.msk [vmem:[%s969_s2 + $0x10] sm:$0xff] %vm358_vm4, %v441_v10  ;;  %v405_v22 = vadd.f32 %v397_v16, %v389_v14 }
 0x174   : > { %v442_v19 = vmul.f32 0.04, %v434_v9  ;;  %v390_v23 = vadd.f32 %v382_v18, %v374_v17  ;;  %v413_v25 = vld [vmem:[#allocation3 + $0x4b] sm:$0xff]  ;;  %v420_v26 = vadd.f32 %v412_v20, %v404_v15  ;;  %v443_v29 = vmul.f32 0.04, %v435_v21  ;;  %v414_v24 = vld [vmem:[#allocation3 + $0x53] sm:$0xff] }
 0x175   : > { %v398_v27 = vld [vmem:[#allocation3 + $0x52] sm:$0xff]  ;;  %v421_v31 = vadd.f32 %v413_v25, %v405_v22 }
 0x176   : > { %450 = vst.msk [vmem:[%s969_s2 + $0x18] sm:$0xff] %vm358_vm4, %v442_v19  ;;  %v406_v30 = vadd.f32 %v398_v27, %v390_v23  ;;  %v436_v33 = vadd.f32 %v428_v28, %v420_v26  ;;  %v429_v32 = vld [vmem:[#allocation3 + $0x4c] sm:$0xff]  ;;  %451 = vst.msk [vmem:[%s969_s2 + $0x20] sm:$0xff] %vm358_vm4, %v443_v29  ;;  %v430_v37 = vld [vmem:[#allocation3 + $0x54] sm:$0xff] }
 0x177   : > { %v437_v35 = vadd.f32 %v429_v32, %v421_v31 }
 0x178   : > { %v422_v34 = vadd.f32 %v414_v24, %v406_v30  ;;  %v444_v36 = vmul.f32 0.04, %v436_v33 }
 0x179   : > { %v445_v39 = vmul.f32 0.04, %v437_v35 }
 0x17a   : > { %v438_v38 = vadd.f32 %v430_v37, %v422_v34  ;;  %452 = vst.msk [vmem:[%s969_s2 + $0x28] sm:$0xff] %vm358_vm4, %v444_v36 }
 0x17b   : > { %453 = vst.msk [vmem:[%s969_s2 + $0x30] sm:$0xff] %vm358_vm4, %v445_v39 }
 0x17c   : > { %v446_v40 = vmul.f32 0.04, %v438_v38 }
 0x17e   : > { %454 = vst.msk [vmem:[%s969_s2 + $0x38] sm:$0xff] %vm358_vm4, %v446_v40 }
 0x17f   : > { %662 = shalt.err (!%p659_p2)
}
 0x180   : > { %s663_s22 = scalar_lea.hbm %s988_s13, 1024  ;;  %s667_s30 = scalar_lea.hbm %s1039_s1, 2048 }
 0x181   : > { %p664_p4 = scmp.ne.s32.totalorder %s988_s13, %s663_s22  ;;  %p668_p9 = scmp.lt.u32.totalorder %s988_s13, %s1039_s1 }
 0x182   : > { %p669_p1 = scmp.lt.u32.totalorder %s667_s30, %s663_s22  ;;  %p671_p6 = scmp.lt.u32.totalorder %s663_s22, %s988_s13 }
 0x183   : > { %p665_p5 = pnand %p664_p4, %p1046_p11 }
 0x184   : > { %p670_p3 = por %p669_p1, %p668_p9 }
 0x185   : > { %p666_p7 = pneg %p665_p5 }
 0x186   : > { %p672_p12 = por %p671_p6, %p670_p3 }
 0x188   : > { %p673_p13 = pnand %p672_p12, %p666_p7 }
 0x18a   : > { %676 = shalt.err (!%p673_p13)
}
 0x18b   : > { %s727_s27 = smov 128   ;;  %s728_s28 = smov 8  }
 0x18c   : > { %565 = dma.vmem_to_hbm [thread:$0]  (%p1046_p11), %s990_s4, 1024, %s988_s13, %s456_s10, %s727_s27, %s727_s27, %s728_s28  }
 0x18d PF: > { %s485_s29 = sand.u32 1, %s703_s6   ;;  %p1047_p8 = scmp.ne.s32.totalorder %s1044_s19, 0 }
 0x18e   : > { %p1048_p10 = scmp.ge.s32.totalorder %s715_s9, 2  ;;  %s486_s2 = scalar_lea.sflag [#allocation6], %s485_s29 }
 0x190   : > { %p572_p0 = pnand %p1048_p10, %p1047_p8 }
 0x192   : > { %698 = dma.done.wait (!%p572_p0), %s486_s2, 1024  }
 0x193   : > { %700 = vsyncadd (!%p572_p0), %s486_s2, 4294966272  ;;  %p14_p2 = scmp.ge.s32.totalorder %s764_s12, 4   ;;  %s1049_s6 = smov %s707_s7 }
 0x194   : > { %s1050_s7 = smov %s711_s8  ;;  %s1051_s8 = smov %s776_s15 }
 0x195   : > { %s1052_s9 = smov %s764_s12  ;;  %16 = sbr.rel (!%p14_p2) target bundleno = 5 (0x5), region = 69 }
 0x19c   :  { %491 = vsyncpa [#allocation5], 1 }
 0x19d   :  { %493 = vsyncpa [#allocation5 + $0x1], 1 }
 0x19e   :  { %494 = vsyncpa [#allocation6], 1 }
 0x19f   :  { %496 = vsyncpa [#allocation6 + $0x1], 1 }

</bundles_post_ra>
